<compile_context>
chip_gen: v5e
topology: v5e:2x2
jax: 0.10.0
libtpu: 0.0.40
codegen_flags: <defaults>
</compile_context>

<pallas_src>
import functools

import jax
import jax.numpy as jnp
from jax.experimental import pallas as pl
from jax.experimental.pallas import tpu as pltpu


def _kqv_kernel(x_ref, wk_ref, bk_ref, wq_ref, bq_ref, wv_ref, bv_ref,
                k_ref, q_ref, v_ref, *, compute_dtype=None):
    """One (batch, column-tile) step: x block is (1, C_in, TN)."""
    cd = compute_dtype if compute_dtype is not None else x_ref.dtype

    x = x_ref[0].astype(cd)            # (C_in, TN)
    wk = wk_ref[...].astype(cd)        # (Ck, C_in)
    wq = wq_ref[...].astype(cd)        # (Cq, C_in)
    wv = wv_ref[...].astype(cd)        # (Cv, C_in)

    # MXU matmuls with f32 accumulation; bias added in f32.
    k = jnp.dot(wk, x, preferred_element_type=jnp.float32) + bk_ref[...]
    q = jnp.dot(wq, x, preferred_element_type=jnp.float32) + bq_ref[...]
    v = jnp.dot(wv, x, preferred_element_type=jnp.float32) + bv_ref[...]

    k_ref[0] = k.astype(k_ref.dtype)
    q_ref[0] = q.astype(q_ref.dtype)
    v_ref[0] = v.astype(v_ref.dtype)


def _pick_tile(n):
    # Largest lane-dense tile that evenly divides N; fall back to full row
    # for tiny spatial maps (then the block equals the full array dim, which
    # also satisfies the tiling constraint).
    for t in (1024, 512, 256, 128):
        if n % t == 0:
            return t
    return n


def kqv_conv_forward(x, wk, bk, wq, bq, wv, bv, *, compute_dtype=None):
    """x: (B, C_in, H, W) NCHW.  Returns (K, Q, V) as in the PyTorch module."""
    B, C_in, H, W = x.shape
    N = H * W
    ck, cq, cv = wk.shape[0], wq.shape[0], wv.shape[0]
    TN = _pick_tile(N)
    grid = (B, N // TN)

    xf = x.reshape(B, C_in, N)
    bk2 = bk.reshape(ck, 1).astype(jnp.float32)
    bq2 = bq.reshape(cq, 1).astype(jnp.float32)
    bv2 = bv.reshape(cv, 1).astype(jnp.float32)

    x_spec = pl.BlockSpec((1, C_in, TN), lambda b, n: (b, 0, n))

    def w_spec(co):
        return pl.BlockSpec((co, C_in), lambda b, n: (0, 0))

    def b_spec(co):
        return pl.BlockSpec((co, 1), lambda b, n: (0, 0))

    def out_spec(co):
        return pl.BlockSpec((1, co, TN), lambda b, n: (b, 0, n))

    c_tot = ck + cq + cv
    itemsize = jnp.dtype(x.dtype).itemsize
    cost = pl.CostEstimate(
        flops=2 * B * N * C_in * c_tot,
        transcendentals=0,
        bytes_accessed=itemsize * (B * C_in * N + B * c_tot * N)
        + 4 * c_tot * (C_in + 1),
    )

    kernel = functools.partial(_kqv_kernel, compute_dtype=compute_dtype)

    k_flat, q_flat, v_flat = pl.pallas_call(
        kernel,
        out_shape=(
            jax.ShapeDtypeStruct((B, ck, N), x.dtype),
            jax.ShapeDtypeStruct((B, cq, N), x.dtype),
            jax.ShapeDtypeStruct((B, cv, N), x.dtype),
        ),
        grid_spec=pltpu.PrefetchScalarGridSpec(
            num_scalar_prefetch=0,
            grid=grid,
            in_specs=[x_spec,
                      w_spec(ck), b_spec(ck),
                      w_spec(cq), b_spec(cq),
                      w_spec(cv), b_spec(cv)],
            out_specs=[out_spec(ck), out_spec(cq), out_spec(cv)],
        ),
        compiler_params=pltpu.CompilerParams(
            dimension_semantics=("parallel", "parallel")),
        cost_estimate=cost,
    )(xf, wk, bk2, wq, bq2, wv, bv2)

    return (k_flat.reshape(B, ck, H, W),
            q_flat.reshape(B, cq, H, W),
            v_flat.reshape(B, cv, H, W))


class KQVConv:
    """JAX/Pallas port of network/CCNet/Block_Attention.py::KQVConv.

    Three 1x1 convolutions (K: in_dim -> in_dim//8, Q: in_dim -> in_dim//8,
    V: in_dim -> in_dim) fused into one Pallas kernel.
    """

    def __init__(self, in_dim, key=None, dtype=jnp.float32):
        if key is None:
            key = jax.random.PRNGKey(0)
        out_kq = in_dim // 8
        k1, k2, k3, k4, k5, k6 = jax.random.split(key, 6)
        scale = 1.0 / jnp.sqrt(jnp.asarray(in_dim, jnp.float32))
        self.wk = jax.random.uniform(k1, (out_kq, in_dim), dtype, -1.0, 1.0) * scale
        self.bk = jax.random.uniform(k2, (out_kq,), dtype, -1.0, 1.0) * scale
        self.wq = jax.random.uniform(k3, (out_kq, in_dim), dtype, -1.0, 1.0) * scale
        self.bq = jax.random.uniform(k4, (out_kq,), dtype, -1.0, 1.0) * scale
        self.wv = jax.random.uniform(k5, (in_dim, in_dim), dtype, -1.0, 1.0) * scale
        self.bv = jax.random.uniform(k6, (in_dim,), dtype, -1.0, 1.0) * scale

    def __call__(self, x, *, compute_dtype=None):
        # compute_dtype=jnp.bfloat16 gives bf16 MXU operands (f32 accumulation)
        # for v6e/v7x; default keeps the input dtype for exactness.
        return kqv_conv_forward(x, self.wk, self.bk, self.wq, self.bq,
                                self.wv, self.bv, compute_dtype=compute_dtype)


def _reference(x, wk, bk, wq, bq, wv, bv):
    """Pure-JAX reference matching the PyTorch forward (1x1 convs)."""
    def conv1x1(w, b):
        y = jnp.einsum('oc,bchw->bohw', w, x,
                       precision=jax.lax.Precision.HIGHEST)
        return y + b[None, :, None, None]
    return conv1x1(wk, bk), conv1x1(wq, bq), conv1x1(wv, bv)


if __name__ == "__main__":
    B, in_dim, H, W = 2, 32, 16, 16  # N = 256 -> TN = 128, grid = (2, 2)

    key = jax.random.PRNGKey(0)
    kx, kp = jax.random.split(key)
    x = jax.random.normal(kx, (B, in_dim, H, W), jnp.float32)

    mod = KQVConv(in_dim, key=kp)
    K, Q, V = mod(x)
    K = jax.block_until_ready(K)
    Q = jax.block_until_ready(Q)
    V = jax.block_until_ready(V)

    Kr, Qr, Vr = _reference(x, mod.wk, mod.bk, mod.wq, mod.bq, mod.wv, mod.bv)
    assert K.shape == (B, in_dim // 8, H, W)
    assert Q.shape == (B, in_dim // 8, H, W)
    assert V.shape == (B, in_dim, H, W)
    assert jnp.allclose(K, Kr, atol=2e-3, rtol=2e-3), "K mismatch vs reference"
    assert jnp.allclose(Q, Qr, atol=2e-3, rtol=2e-3), "Q mismatch vs reference"
    assert jnp.allclose(V, Vr, atol=2e-3, rtol=2e-3), "V mismatch vs reference"

    print("KERNEL_OK")
</pallas_src>

<mosaic_0001>
module attributes {stable_mosaic.version = 11 : i64} {
  func.func @_kqv_kernel(%arg0: i32, %arg1: i32, %arg2: memref<1x32x256xf32, #tpu.memory_space<vmem>>, %arg3: memref<4x32xf32, #tpu.memory_space<vmem>>, %arg4: memref<4x1xf32, #tpu.memory_space<vmem>>, %arg5: memref<4x32xf32, #tpu.memory_space<vmem>>, %arg6: memref<4x1xf32, #tpu.memory_space<vmem>>, %arg7: memref<32x32xf32, #tpu.memory_space<vmem>>, %arg8: memref<32x1xf32, #tpu.memory_space<vmem>>, %arg9: memref<1x4x256xf32, #tpu.memory_space<vmem>>, %arg10: memref<1x4x256xf32, #tpu.memory_space<vmem>>, %arg11: memref<1x32x256xf32, #tpu.memory_space<vmem>>) attributes {dimension_semantics = [#tpu.dimension_semantics<parallel>, #tpu.dimension_semantics<parallel>], iteration_bounds = array<i64: 2, 1>, scalar_prefetch = 0 : i64, scratch_operands = 0 : i64, tpu.core_type = #tpu.core_type<tc>, window_params = [{transform_indices = @transform_0, window_bounds = array<i64: 1, 32, 256>}, {pipeline_mode = #tpu.pipeline_mode<synchronous>, transform_indices = @transform_1, window_bounds = array<i64: 4, 32>}, {pipeline_mode = #tpu.pipeline_mode<synchronous>, transform_indices = @transform_2, window_bounds = array<i64: 4, 1>}, {pipeline_mode = #tpu.pipeline_mode<synchronous>, transform_indices = @transform_3, window_bounds = array<i64: 4, 32>}, {pipeline_mode = #tpu.pipeline_mode<synchronous>, transform_indices = @transform_4, window_bounds = array<i64: 4, 1>}, {pipeline_mode = #tpu.pipeline_mode<synchronous>, transform_indices = @transform_5, window_bounds = array<i64: 32, 32>}, {pipeline_mode = #tpu.pipeline_mode<synchronous>, transform_indices = @transform_6, window_bounds = array<i64: 32, 1>}, {transform_indices = @transform_7, window_bounds = array<i64: 1, 4, 256>}, {transform_indices = @transform_8, window_bounds = array<i64: 1, 4, 256>}, {transform_indices = @transform_9, window_bounds = array<i64: 1, 32, 256>}]} {
    %c0 = arith.constant 0 : index
    %c0_0 = arith.constant 0 : index
    %c0_1 = arith.constant 0 : index
    %0 = vector.load %arg2[%c0, %c0_0, %c0_1] : memref<1x32x256xf32, #tpu.memory_space<vmem>>, vector<1x32x256xf32>
    %1 = vector.shape_cast %0 : vector<1x32x256xf32> to vector<32x256xf32>
    %c0_2 = arith.constant 0 : index
    %c0_3 = arith.constant 0 : index
    %2 = vector.load %arg3[%c0_2, %c0_3] : memref<4x32xf32, #tpu.memory_space<vmem>>, vector<4x32xf32>
    %c0_4 = arith.constant 0 : index
    %c0_5 = arith.constant 0 : index
    %3 = vector.load %arg5[%c0_4, %c0_5] : memref<4x32xf32, #tpu.memory_space<vmem>>, vector<4x32xf32>
    %c0_6 = arith.constant 0 : index
    %c0_7 = arith.constant 0 : index
    %4 = vector.load %arg7[%c0_6, %c0_7] : memref<32x32xf32, #tpu.memory_space<vmem>>, vector<32x32xf32>
    %cst = arith.constant dense<0.000000e+00> : vector<4x256xf32>
    %5 = tpu.matmul %2, %1, %cst {dimension_numbers = #tpu.dot_dimension_numbers<[1], [0], [0], [1], [0, 0, 1, 1], [], []>} : vector<4x32xf32>, vector<32x256xf32>, vector<4x256xf32> -> vector<4x256xf32>
    %c0_8 = arith.constant 0 : index
    %c0_9 = arith.constant 0 : index
    %6 = vector.load %arg4[%c0_8, %c0_9] : memref<4x1xf32, #tpu.memory_space<vmem>>, vector<4x1xf32>
    %7 = vector.broadcast %6 : vector<4x1xf32> to vector<4x256xf32>
    %8 = arith.addf %5, %7 : vector<4x256xf32>
    %cst_10 = arith.constant dense<0.000000e+00> : vector<4x256xf32>
    %9 = tpu.matmul %3, %1, %cst_10 {dimension_numbers = #tpu.dot_dimension_numbers<[1], [0], [0], [1], [0, 0, 1, 1], [], []>} : vector<4x32xf32>, vector<32x256xf32>, vector<4x256xf32> -> vector<4x256xf32>
    %c0_11 = arith.constant 0 : index
    %c0_12 = arith.constant 0 : index
    %10 = vector.load %arg6[%c0_11, %c0_12] : memref<4x1xf32, #tpu.memory_space<vmem>>, vector<4x1xf32>
    %11 = vector.broadcast %10 : vector<4x1xf32> to vector<4x256xf32>
    %12 = arith.addf %9, %11 : vector<4x256xf32>
    %cst_13 = arith.constant dense<0.000000e+00> : vector<32x256xf32>
    %13 = tpu.matmul %4, %1, %cst_13 {dimension_numbers = #tpu.dot_dimension_numbers<[1], [0], [0], [1], [0, 0, 1, 1], [], []>} : vector<32x32xf32>, vector<32x256xf32>, vector<32x256xf32> -> vector<32x256xf32>
    %c0_14 = arith.constant 0 : index
    %c0_15 = arith.constant 0 : index
    %14 = vector.load %arg8[%c0_14, %c0_15] : memref<32x1xf32, #tpu.memory_space<vmem>>, vector<32x1xf32>
    %15 = vector.broadcast %14 : vector<32x1xf32> to vector<32x256xf32>
    %16 = arith.addf %13, %15 : vector<32x256xf32>
    %c0_16 = arith.constant 0 : index
    %c0_17 = arith.constant 0 : index
    %c0_18 = arith.constant 0 : index
    %17 = vector.load %arg9[%c0_16, %c0_17, %c0_18] : memref<1x4x256xf32, #tpu.memory_space<vmem>>, vector<1x4x256xf32>
    %18 = vector.shape_cast %17 : vector<1x4x256xf32> to vector<4x256xf32>
    %19 = vector.shape_cast %8 : vector<4x256xf32> to vector<1x4x256xf32>
    tpu.vector_store %arg9[%c0_16, %c0_17, %c0_18], %19 {strides = array<i32>} : memref<1x4x256xf32, #tpu.memory_space<vmem>>, vector<1x4x256xf32>,
    %c0_19 = arith.constant 0 : index
    %c0_20 = arith.constant 0 : index
    %c0_21 = arith.constant 0 : index
    %20 = vector.load %arg10[%c0_19, %c0_20, %c0_21] : memref<1x4x256xf32, #tpu.memory_space<vmem>>, vector<1x4x256xf32>
    %21 = vector.shape_cast %20 : vector<1x4x256xf32> to vector<4x256xf32>
    %22 = vector.shape_cast %12 : vector<4x256xf32> to vector<1x4x256xf32>
    tpu.vector_store %arg10[%c0_19, %c0_20, %c0_21], %22 {strides = array<i32>} : memref<1x4x256xf32, #tpu.memory_space<vmem>>, vector<1x4x256xf32>,
    %c0_22 = arith.constant 0 : index
    %c0_23 = arith.constant 0 : index
    %c0_24 = arith.constant 0 : index
    %23 = vector.load %arg11[%c0_22, %c0_23, %c0_24] : memref<1x32x256xf32, #tpu.memory_space<vmem>>, vector<1x32x256xf32>
    %24 = vector.shape_cast %23 : vector<1x32x256xf32> to vector<32x256xf32>
    %25 = vector.shape_cast %16 : vector<32x256xf32> to vector<1x32x256xf32>
    tpu.vector_store %arg11[%c0_22, %c0_23, %c0_24], %25 {strides = array<i32>} : memref<1x32x256xf32, #tpu.memory_space<vmem>>, vector<1x32x256xf32>,
    return
  }
  func.func @transform_0(%arg0: i32, %arg1: i32) -> (i32, i32, i32) {
    %c0_i32 = arith.constant 0 : i32
    %c0_i32_0 = arith.constant 0 : i32
    return %arg0, %c0_i32, %arg1 : i32, i32, i32
  }
  func.func @transform_1(%arg0: i32, %arg1: i32) -> (i32, i32) {
    %c0_i32 = arith.constant 0 : i32
    %c0_i32_0 = arith.constant 0 : i32
    %c0_i32_1 = arith.constant 0 : i32
    return %c0_i32, %c0_i32_0 : i32, i32
  }
  func.func @transform_2(%arg0: i32, %arg1: i32) -> (i32, i32) {
    %c0_i32 = arith.constant 0 : i32
    %c0_i32_0 = arith.constant 0 : i32
    %c0_i32_1 = arith.constant 0 : i32
    return %c0_i32, %c0_i32_0 : i32, i32
  }
  func.func @transform_3(%arg0: i32, %arg1: i32) -> (i32, i32) {
    %c0_i32 = arith.constant 0 : i32
    %c0_i32_0 = arith.constant 0 : i32
    %c0_i32_1 = arith.constant 0 : i32
    return %c0_i32, %c0_i32_0 : i32, i32
  }
  func.func @transform_4(%arg0: i32, %arg1: i32) -> (i32, i32) {
    %c0_i32 = arith.constant 0 : i32
    %c0_i32_0 = arith.constant 0 : i32
    %c0_i32_1 = arith.constant 0 : i32
    return %c0_i32, %c0_i32_0 : i32, i32
  }
  func.func @transform_5(%arg0: i32, %arg1: i32) -> (i32, i32) {
    %c0_i32 = arith.constant 0 : i32
    %c0_i32_0 = arith.constant 0 : i32
    %c0_i32_1 = arith.constant 0 : i32
    return %c0_i32, %c0_i32_0 : i32, i32
  }
  func.func @transform_6(%arg0: i32, %arg1: i32) -> (i32, i32) {
    %c0_i32 = arith.constant 0 : i32
    %c0_i32_0 = arith.constant 0 : i32
    %c0_i32_1 = arith.constant 0 : i32
    return %c0_i32, %c0_i32_0 : i32, i32
  }
  func.func @transform_7(%arg0: i32, %arg1: i32) -> (i32, i32, i32) {
    %c0_i32 = arith.constant 0 : i32
    %c0_i32_0 = arith.constant 0 : i32
    return %arg0, %c0_i32, %arg1 : i32, i32, i32
  }
  func.func @transform_8(%arg0: i32, %arg1: i32) -> (i32, i32, i32) {
    %c0_i32 = arith.constant 0 : i32
    %c0_i32_0 = arith.constant 0 : i32
    return %arg0, %c0_i32, %arg1 : i32, i32, i32
  }
  func.func @transform_9(%arg0: i32, %arg1: i32) -> (i32, i32, i32) {
    %c0_i32 = arith.constant 0 : i32
    %c0_i32_0 = arith.constant 0 : i32
    return %arg0, %c0_i32, %arg1 : i32, i32, i32
  }
}

</mosaic_0001>

<bundles_post_ra>
// kernel: tpu_custom_call.1
= control target key start
LH: loop header
LB: loop body
LE: loop exit
PB: predicated region body
PF: predicated region fallthrough
CT: control target
= control target key end

     0   :  { %s1436_s0 = inlined_call_operand.hbm [shape: f32[2,32,256], index: 0, kind: input, shape index: {}]   ;;  %s1437_s1 = inlined_call_operand.vmem [shape: f32[4,32], index: 1, kind: input, shape index: {}]   ;;  %s1438_s2 = inlined_call_operand.vmem [shape: f32[4,1], index: 2, kind: input, shape index: {}]   ;;  %s1439_s3 = inlined_call_operand.vmem [shape: f32[4,32], index: 3, kind: input, shape index: {}]   ;;  %s1440_s4 = inlined_call_operand.vmem [shape: f32[4,1], index: 4, kind: input, shape index: {}]   ;;  %s1441_s5 = inlined_call_operand.vmem [shape: f32[32,32], index: 5, kind: input, shape index: {}]   ;;  %s1442_s6 = inlined_call_operand.vmem [shape: f32[32,1], index: 6, kind: input, shape index: {}]   ;;  %s1443_s7 = inlined_call_operand.hbm [shape: f32[2,4,256], index: 7, kind: output, shape index: {0}]   ;;  %s1444_s8 = inlined_call_operand.hbm [shape: f32[2,4,256], index: 8, kind: output, shape index: {1}]   ;;  %s1445_s9 = inlined_call_operand.hbm [shape: f32[2,32,256], index: 9, kind: output, shape index: {2}]  }
   0x1   :  { %1451 = sst [smem:[#allocation16_spill]] %s1436_s0 }
   0x2   :  { %1452 = sst [smem:[#allocation17_spill]] %s1437_s1 }
   0x3   :  { %1453 = sst [smem:[#allocation18_spill]] %s1445_s9 }
   0x4   :  { %15 = vsyncpa [#allocation3], 0 }
   0x5   :  { %17 = vsyncpa [#allocation3 + $0x1], 0 }
   0x6   :  { %18 = vsyncpa [#allocation4], 0 }
   0x7   :  { %20 = vsyncpa [#allocation4 + $0x1], 0 }
   0x8   :  { %21 = vsyncpa [#allocation7], 0 }
   0x9   :  { %23 = vsyncpa [#allocation7 + $0x1], 0  ;;  %s1199_s30 = smov 0   ;;  %s1201_s10 = smov 0  }
   0xa   :  { %s1203_s11 = smov 0   ;;  %s1205_s12 = smov 0  }
   0xb   :  { %s1207_s13 = smov 0   ;;  %s1209_s14 = smov 0  }
   0xc LB: > { %1454 = sst [smem:[#allocation12_spill]] %s1122_s30  ;;  %s1230_s15 = sadd.s32 4294967295, %s1142_s14   ;;  %s1142_s14 = sphi %s1209_s14, %s29_s14   ;;  %s1138_s13 = sphi %s1207_s13, %s1470_s13   ;;  %s1134_s12 = sphi %s1205_s12, %s1469_s12   ;;  %s1130_s11 = sphi %s1203_s11, %s1473_s11   ;;  %s1126_s10 = sphi %s1201_s10, %s1472_s10   ;;  %s1122_s30 = sphi %s1199_s30, %s1471_s30  }
   0xd   : > { %1455 = sst [smem:[#allocation13_spill]] %s1138_s13  ;;  %s1449_s16 = sadd.s32 4294967294, %s1142_s14  }
   0xe   : > { %s41_s17 = sadd.s32 1, %s1138_s13  ;;  %s50_s18 = sadd.s32 1, %s1130_s11 }
   0xf   : > { %p43_p0 = scmp.ge.s32.totalorder %s41_s17, 2  ;;  %p57_p1 = scmp.ne.s32.totalorder %s1130_s11, %s1126_s10 }
  0x10   : > { %p58_p2 = scmp.eq.s32.totalorder %s1142_s14, 0  ;;  %p63_p3 = scmp.ne.s32.totalorder %s1126_s10, %s1122_s30 }
  0x11   : > { %s1475_s17 = smov (%p43_p0, %s41_s17), 0  ;;  %p64_p5 = scmp.eq.s32.totalorder %s1230_s15, 0 }
  0x12   : > { %1456 = sst [smem:[#allocation14_spill]] %s1475_s17  ;;  %p1242_p4 = por %p58_p2, %p57_p1 }
  0x13   : > { %s45_s20 = ssub.s32 %s1138_s13, %s1475_s17  ;;  %p215_p6 = scmp.eq.s32.totalorder %s1230_s15, 1 }
  0x14   : > { %p48_p7 = scmp.eq.s32.totalorder %s45_s20, 0  ;;  %p1250_p8 = por %p64_p5, %p63_p3 }
  0x15   : > { %p1254_p9 = por %p215_p6, %p57_p1  ;;  %p221_p10 = scmp.eq.s32.totalorder %s1449_s16, 1 }
  0x16   : > { %s1261_s23 = scalar_select %p48_p7, %s1130_s11, %s50_s18  }
  0x17   : > { %p1263_p11 = por %p221_p10, %p63_p3  ;;  %p846_p12 = scmp.ge.s32.totalorder %s1142_s14, 2 }
  0x18   : > { %1460 = sst [smem:[#allocation15_spill]] %s1261_s23  ;;  %p912_p13 = scmp.lt.s32.totalorder %s1142_s14, 2 }
  0x19   : > { %s315_s25 = sand.u32 1, %s1130_s11   ;;  %s878_s27 = sshll.u32 %s1138_s13, 6 }
  0x1a   : > { %s847_s26 = sshll.u32 %s315_s25, 6  ;;  %s1462_s0 = sld [smem:[#allocation16_spill]] }
  0x1b   : > { %s319_s17 = scalar_lea.vmem [#allocation2], %s847_s26  ;;  %p899_p0 = pnand %p912_p13, %p1242_p4 }
  0x1c   : > { %s329_s30 = sshll.u32 %s319_s17, 4  ;;  %p850_p1 = scmp.ge.s32.totalorder %s1142_s14, 1  ;;  %s330_s30 = int_to_ptr.vmem [resolvable:$true] %s329_s30 }
  0x1d   : > { %s316_s18 = scalar_lea.sflag [#allocation3], %s315_s25  ;;  %s1144_s16 = smov 256  }
  0x1e   : > { %s1145_s23 = smov 16   ;;  %p337_p2 = scmp.lt.s32.totalorder %s1142_s14, 3 }
  0x20   : > { %s326_s20 = scalar_lea.hbm %s1462_s0, %s878_s27  ;;  %p338_p3 = pnand %p850_p1, %p337_p2 }
  0x21   : > { %s327_s9 = sshll.u32 %s326_s20, 4  ;;  %s1279_s13 = sand.u32 (!%p338_p3), 1, %s1126_s10   ;;  %s328_s9 = int_to_ptr.hbm [resolvable:$true] %s327_s9 }
  0x22   : > { %901 = dma.hbm_to_vmem [thread:$0]  (!%p899_p0), %s328_s9, 1024, %s330_s30, %s316_s18, %s1144_s16, %s1144_s16, %s1145_s23  }
  0x23   : > { %341 = sbr.rel (%p338_p3) target bundleno = 226 (0xe2), region = 48  ;;  %s851_s17 = sshll.u32 (!%p338_p3), %s1279_s13, 6 }
  0x24   : > { %s344_s26 = scalar_lea.sflag (!%p338_p3), [#allocation3], %s1279_s13  ;;  %s347_s19 = scalar_lea.vmem (!%p338_p3), [#allocation2], %s851_s17 }
  0x28   : > { %1109 = dma.done.wait (%p1250_p8), %s344_s26, 1024  }
  0x29   : > { %1111 = vsyncadd (%p1250_p8), %s344_s26, 4294966272  ;;  %v1146_v0 = vmov 0   ;;  %v403_v1 = vld [vmem:[%s347_s19 + $0x30] sm:$0xff]  ;;  %v404_v2 = vld [vmem:[%s347_s19 + $0x38] sm:$0xff]  ;;  %s1463_s1 = sld [smem:[#allocation17_spill]]  ;;  %vm417_vm0 = vcmask 261120  }
  0x2a   : > { %967 = vset.pattern.permute.xlu0 %v1146_v0  ;;  %968 = vset.pattern.permute.xlu1 %v1146_v0  ;;  %v401_v3 = vld [vmem:[%s347_s19 + $0x20] sm:$0xff]  ;;  %v402_v4 = vld [vmem:[%s347_s19 + $0x28] sm:$0xff]  ;;  %v399_v5 = vld [vmem:[%s347_s19 + $0x10] sm:$0xff]  ;;  %s879_s26 = sshll.u32 %s1134_s12, 3  ;;  %vm607_vm1 = vcmask 1043456   ;;  %s1020_s20 = scalar_lea.hbm %s1443_s7, 16 }
  0x2b   : > { %969 = vset.pattern.permute.xlu2 %v1146_v0  ;;  %433 = vmatpush.msra.mxu0 %v403_v1  ;;  %v400_v6 = vld [vmem:[%s347_s19 + $0x18] sm:$0xff]  ;;  %v397_v7 = vld [vmem:[%s347_s19] sm:$0xff]  ;;  %v398_v8 = vld [vmem:[%s347_s19 + $0x8] sm:$0xff]  ;;  %s852_s19 = sshll.u32 %s1279_s13, 3  ;;  %s649_s16 = scalar_lea.hbm %s1443_s7, %s879_s26 }
  0x2c   : > { %453 = vmatpush.msra.mxu1 %v404_v2  ;;  %482 = vmatpush.msra.mxu2 %v403_v1  ;;  %v406_v10 = vld [vmem:[%s1439_s3] sm:$0xf]  ;;  %v409_v13 = vld [vmem:[%s1441_s5 + $0x10] sm:$0xff]  ;;  %v408_v17 = vld [vmem:[%s1441_s5 + $0x8] sm:$0xff]  ;;  %s666_s25 = scalar_lea.hbm %s1444_s8, %s879_s26  ;;  %s378_s27 = scalar_lea.vmem [#allocation5], %s852_s19 }
  0x2d   : > { %502 = vmatpush.msra.mxu3 %v404_v2  ;;  %434 = vmatpush.msra.mxu0 %v401_v3  ;;  %v461_v11 = vld [vmem:[%s1440_s4] sm:$0xf]  ;;  %v512_v15 = vld [vmem:[%s1442_s6 + $0x10] sm:$0xff]  ;;  %v410_v18 = vld [vmem:[%s1441_s5 + $0x18] sm:$0xff]  ;;  %s651_s28 = sshll.u32 %s378_s27, 4  ;;  %s653_s29 = sshll.u32 %s649_s16, 4  ;;  %s652_s28 = int_to_ptr.vmem [resolvable:$true] %s651_s28  ;;  %s654_s29 = int_to_ptr.hbm [resolvable:$true] %s653_s29 }
  0x2e   : > { %454 = vmatpush.msra.mxu1 %v402_v4  ;;  %483 = vmatpush.msra.mxu2 %v401_v3  ;;  %v407_v12 = vld [vmem:[%s1441_s5] sm:$0xff]  ;;  %v511_v19 = vld [vmem:[%s1442_s6 + $0x8] sm:$0xff]  ;;  %v513_v20 = vld [vmem:[%s1442_s6 + $0x18] sm:$0xff]  ;;  %s1346_s18 = scalar_lea.vmem [#allocation6], %s852_s19  ;;  %s670_s30 = sshll.u32 %s666_s25, 4  ;;  %s1351_s30 = int_to_ptr.hbm [resolvable:$true] %s670_s30 }
  0x2f   : > { %503 = vmatpush.msra.mxu3 %v402_v4  ;;  %435 = vmatpush.msra.mxu0 %v399_v5  ;;  %v405_v9 = vld [vmem:[%s1463_s1] sm:$0xf]  ;;  %s668_s9 = sshll.u32 %s1346_s18, 4  ;;  %s1355_s26 = scalar_lea.vmem [#allocation8], %s851_s17  ;;  %s1349_s9 = int_to_ptr.vmem [resolvable:$true] %s668_s9 }
  0x30   : > { %455 = vmatpush.msra.mxu1 %v400_v6  ;;  %484 = vmatpush.msra.mxu2 %v399_v5  ;;  %v510_v14 = vld [vmem:[%s1442_s6] sm:$0xff]  ;;  %s626_s19 = scalar_lea.sflag [#allocation4], %s1279_s13  ;;  %s1014_s16 = sshra.s32 %s654_s29, 4  ;;  %s1015_s16 = int_to_ptr.hbm [resolvable:$true] %s1014_s16 }
  0x31   : > { %504 = vmatpush.msra.mxu3 %v400_v6  ;;  %436 = vmatpush.msra.mxu0 %v397_v7  ;;  %v411_v16 = vld [vmem:[%s1438_s2] sm:$0xf]  ;;  %s1016_s21 = scalar_lea.hbm %s1015_s16, 8  ;;  %p1021_p7 = scmp.lt.s32.totalorder %s1015_s16, %s1443_s7 }
  0x32   : > { %456 = vmatpush.msra.mxu1 %v398_v8  ;;  %485 = vmatpush.msra.mxu2 %v397_v7  ;;  %p1017_p4 = scmp.ne.s32.totalorder %s1015_s16, %s1016_s21  ;;  %p1022_p8 = scmp.lt.s32.totalorder %s1020_s20, %s1016_s21 }
  0x33   : > { %505 = vmatpush.msra.mxu3 %v398_v8  ;;  %855 = vmatmul.msk.f32.vlgmr.msra.gmra.mxu0 %vm417_vm0, %v405_v9 }
  0x34   : > { %856 = vmatmul.msk.f32.vlgmr.msra.gmra.mxu1 %vm417_vm0, %v405_v9  ;;  %857 = vmatmul.msk.f32.vlgmr.msra.gmra.mxu2 %vm417_vm0, %v406_v10  ;;  %p1018_p5 = pnand %p1017_p4, %p1254_p9  ;;  %p1023_p10 = por %p1022_p8, %p1021_p7 }
  0x35   : > { %858 = vmatmul.msk.f32.vlgmr.msra.gmra.mxu3 %vm417_vm0, %v406_v10  ;;  %882 = vmatpush.msrb.mxu2 %v403_v1 }
  0x36   : > { %886 = vmatpush.msrb.mxu3 %v404_v2  ;;  %558 = vmatpush.msrb.mxu0 %v403_v1  ;;  %p1019_p6 = pneg %p1018_p5 }
  0x37   : > { %587 = vmatpush.msrb.mxu1 %v404_v2  ;;  %883 = vmatpush.msrb.mxu2 %v401_v3 }
  0x38   : > { %887 = vmatpush.msrb.mxu3 %v402_v4  ;;  %559 = vmatpush.msrb.mxu0 %v401_v3  ;;  %p1024_p13 = pnand %p1023_p10, %p1019_p6 }
  0x39   : > { %588 = vmatpush.msrb.mxu1 %v402_v4  ;;  %884 = vmatpush.msrb.mxu2 %v399_v5 }
  0x3a   : > { %888 = vmatpush.msrb.mxu3 %v400_v6  ;;  %560 = vmatpush.msrb.mxu0 %v399_v5 }
  0x3b   : > { %589 = vmatpush.msrb.mxu1 %v400_v6  ;;  %885 = vmatpush.msrb.mxu2 %v397_v7 }
  0x3c   : > { %889 = vmatpush.msrb.mxu3 %v398_v8  ;;  %464 = vperm.xlu0 %967, %v461_v11  }
  0x3d   : > { %561 = vmatpush.msrb.mxu0 %v397_v7  ;;  %590 = vmatpush.msrb.mxu1 %v398_v8 }
  0x3e   : > { %859 = vmatmul.msk.f32.vlgmr.msrb.gmra.mxu0 %vm417_vm0, %v407_v12  ;;  %861 = vmatmul.msk.f32.vlgmr.msrb.gmra.mxu2 %vm417_vm0, %v409_v13 }
  0x3f   : > { %863 = vmatmul.msk.f32.vlgmr.msrb.gmra.mxu1 %vm417_vm0, %v407_v12  ;;  %865 = vmatmul.msk.f32.vlgmr.msrb.gmra.mxu3 %vm417_vm0, %v409_v13 }
  0x40   : > { %516 = vperm.xlu1 %968, %v510_v14   ;;  %526 = vperm.xlu2 %969, %v512_v15  }
  0x44   : > { %414 = vperm.xlu0 %967, %v411_v16  }
  0x46   : > { %860 = vmatmul.msk.f32.gmra.mxu0 %vm417_vm0, %v408_v17  ;;  %862 = vmatmul.msk.f32.gmra.mxu2 %vm417_vm0, %v410_v18 }
  0x47   : > { %864 = vmatmul.msk.f32.gmra.mxu1 %vm417_vm0, %v408_v17  ;;  %866 = vmatmul.msk.f32.gmra.mxu3 %vm417_vm0, %v410_v18 }
  0x48   : > { %521 = vperm.xlu1 %968, %v511_v19   ;;  %531 = vperm.xlu2 %969, %v513_v20  }
  0xae   : > { %v465_v21 = vpop.permute.xlu0 %464 }
  0xb0   : > { %v438_v22 = vpop.f32.mrf.mxu0 }
  0xb1   : > { %v458_v23 = vpop.f32.mrf.mxu1 }
  0xb2   : > { %v517_v25 = vpop.permute.xlu1 %516 }
  0xb6   : > { %v415_v24 = vpop.permute.xlu0 %414 }
  0xb7   : > { %v439_v26 = vadd.f32 %v438_v22, %v415_v24  ;;  %v459_v27 = vadd.f32 %v458_v23, %v415_v24  ;;  %v487_v28 = vpop.f32.mrf.mxu2 }
  0xb8   : > { %v507_v29 = vpop.f32.mrf.mxu3  ;;  %v488_v32 = vadd.f32 %v487_v28, %v465_v21 }
  0xb9   : > { %v508_v30 = vadd.f32 %v507_v29, %v465_v21  ;;  %v606_v31 = vrot.slane %v459_v27, 4 }
  0xbb   : > { %v613_v33 = vrot.slane %v508_v30, 4  ;;  %v563_v34 = vpop.f32.mrf.mxu0  ;;  %v608_v35 = vsel %vm607_vm1, %v439_v26, %v606_v31 }
  0xbc   : > { %v564_v36 = vadd.f32 %v563_v34, %v517_v25  ;;  %v592_v37 = vpop.f32.mrf.mxu1  ;;  %610 = vst [vmem:[%s378_s27] sm:$0xff] %v608_v35 }
  0xbd   : > { %v614_v38 = vsel %vm607_vm1, %v488_v32, %v613_v33  ;;  %v593_v39 = vadd.f32 %v592_v37, %v517_v25 }
  0xbe   : > { %617 = vst [vmem:[%s1355_s26] sm:$0xff] %v564_v36 }
  0xbf   : > { %1027 = shalt.err (!%p1024_p13)
}
  0xc0   : > { %892 = dma.vmem_to_hbm [thread:$0]  (%p1254_p9), %s652_s28, 128, %s654_s29, %s626_s19   ;;  %618 = vst [vmem:[%s1355_s26 + $0x8] sm:$0xff] %v593_v39  ;;  %v527_v40 = vpop.permute.xlu2 %526 }
  0xc1   : > { %616 = vst [vmem:[%s1346_s18] sm:$0xff] %v614_v38  ;;  %s1464_s13 = sand.u32 1, %s1230_s15   ;;  %s1042_s0 = sshra.s32 %s1351_s30, 4  ;;  %s1043_s0 = int_to_ptr.hbm [resolvable:$true] %s1042_s0 }
  0xc2   : > { %s1373_s17 = scalar_lea.sflag [#allocation7], %s1464_s13  ;;  %s1044_s1 = scalar_lea.hbm %s1043_s0, 8 }
  0xc3   : > { %p1045_p0 = scmp.ne.s32.totalorder %s1043_s0, %s1044_s1  ;;  %s1048_s16 = scalar_lea.hbm %s1444_s8, 16 }
  0xc4   : > { %p1049_p3 = scmp.lt.s32.totalorder %s1043_s0, %s1444_s8  ;;  %p1050_p4 = scmp.lt.s32.totalorder %s1048_s16, %s1044_s1 }
  0xc5   : > { %p1046_p1 = pnand %p1045_p0, %p1254_p9 }
  0xc6   : > { %p1051_p5 = por %p1050_p4, %p1049_p3 }
  0xc7   : > { %p1047_p2 = pneg %p1046_p1 }
  0xc9   : > { %p1052_p6 = pnand %p1051_p5, %p1047_p2 }
  0xcb   : > { %1055 = shalt.err (!%p1052_p6)
}
  0xcc   : > { %893 = dma.vmem_to_hbm [thread:$0]  (%p1254_p9), %s1349_s9, 128, %s1351_s30, %s1373_s17   ;;  %v522_v41 = vpop.permute.xlu1 %521  ;;  %v569_v42 = vpop.f32.mrf.mxu2 }
  0xcd   : > { %v570_v43 = vadd.f32 %v569_v42, %v527_v40  ;;  %v598_v44 = vpop.f32.mrf.mxu3  ;;  %v566_v45 = vpop.f32.mrf.mxu0  ;;  %s881_s15 = sshll.u32 %s1134_s12, 6  ;;  %s1465_s18 = sld [smem:[#allocation18_spill]] }
  0xce   : > { %v599_v46 = vadd.f32 %v598_v44, %v527_v40  ;;  %v567_v47 = vadd.f32 %v566_v45, %v522_v41  ;;  %v595_v48 = vpop.f32.mrf.mxu1  ;;  %s684_s9 = sshll.u32 %s1355_s26, 4  ;;  %v532_v50 = vpop.permute.xlu2 %531  ;;  %s685_s9 = int_to_ptr.vmem [resolvable:$true] %s684_s9 }
  0xcf   : > { %621 = vst [vmem:[%s1355_s26 + $0x20] sm:$0xff] %v570_v43  ;;  %v596_v49 = vadd.f32 %v595_v48, %v522_v41 }
  0xd0   : > { %622 = vst [vmem:[%s1355_s26 + $0x28] sm:$0xff] %v599_v46 }
  0xd1   : > { %619 = vst [vmem:[%s1355_s26 + $0x10] sm:$0xff] %v567_v47 }
  0xd2   : > { %620 = vst [vmem:[%s1355_s26 + $0x18] sm:$0xff] %v596_v49 }
  0xd3   : > { %s683_s19 = scalar_lea.hbm %s1465_s18, %s881_s15  ;;  %s1076_s1 = scalar_lea.hbm %s1465_s18, 128 }
  0xd4   : > { %s686_s30 = sshll.u32 %s683_s19, 4  ;;  %v572_v51 = vpop.f32.mrf.mxu2  ;;  %s687_s30 = int_to_ptr.hbm [resolvable:$true] %s686_s30 }
  0xd5   : > { %v573_v52 = vadd.f32 %v572_v51, %v532_v50  ;;  %v601_v53 = vpop.f32.mrf.mxu3  ;;  %s1070_s12 = sshra.s32 %s687_s30, 4  ;;  %s1071_s12 = int_to_ptr.hbm [resolvable:$true] %s1070_s12 }
  0xd6   : > { %v602_v54 = vadd.f32 %v601_v53, %v532_v50  ;;  %s1072_s25 = scalar_lea.hbm %s1071_s12, 64  ;;  %p1077_p13 = scmp.lt.s32.totalorder %s1071_s12, %s1465_s18 }
  0xd7   : > { %623 = vst [vmem:[%s1355_s26 + $0x30] sm:$0xff] %v573_v52  ;;  %p1073_p7 = scmp.ne.s32.totalorder %s1071_s12, %s1072_s25  ;;  %p1078_p0 = scmp.lt.s32.totalorder %s1076_s1, %s1072_s25 }
  0xd8   : > { %624 = vst [vmem:[%s1355_s26 + $0x38] sm:$0xff] %v602_v54 }
  0xd9   : > { %p1074_p8 = pnand %p1073_p7, %p1254_p9  ;;  %p1079_p1 = por %p1078_p0, %p1077_p13 }
  0xdb   : > { %p1075_p10 = pneg %p1074_p8 }
  0xdd   : > { %p1080_p2 = pnand %p1079_p1, %p1075_p10 }
  0xdf   : > { %1083 = shalt.err (!%p1080_p2)
}
  0xe0   : > { %s1147_s26 = smov 256   ;;  %s1148_s16 = smov 16  }
  0xe1   : > { %894 = dma.vmem_to_hbm [thread:$0]  (%p1254_p9), %s685_s9, 1024, %s687_s30, %s1373_s17, %s1147_s26, %s1147_s26, %s1148_s16  }
  0xe2 PF: > { %s1466_s21 = sld [smem:[#allocation12_spill]]  ;;  %p903_p3 = pnand %p846_p12, %p1263_p11 }
  0xe4   : > { %p904_p4 = pneg %p903_p3 }
  0xe8   : > { %s701_s23 = sand.u32 1, %s1466_s21  }
  0xe9   : > { %s702_s15 = scalar_lea.sflag [#allocation4], %s701_s23 }
  0xea   : > { %1113 = dma.done.wait (%p904_p4), %s702_s15, 128  }
  0xeb   : > { %1115 = vsyncadd (%p904_p4), %s702_s15, 4294967168  ;;  %s1467_s28 = sadd.s32 4294967294, %s1142_s14  }
  0xec   : > { %s711_s29 = sand.u32 1, %s1467_s28  }
  0xed   : > { %s712_s19 = scalar_lea.sflag [#allocation7], %s711_s29 }
  0xee   : > { %1117 = dma.done.wait (%p904_p4), %s712_s19, 1152  }
  0xef   : > { %1119 = vsyncadd (%p904_p4), %s712_s19, 4294966144  ;;  %s29_s14 = sadd.s32 1, %s1142_s14   ;;  %s1468_s22 = sld [smem:[#allocation15_spill]] }
  0xf0   : > { %p26_p9 = scmp.ge.s32.totalorder %s29_s14, 4   ;;  %s1469_s12 = sld [smem:[#allocation13_spill]] }
  0xf1   : > { %s1470_s13 = sld [smem:[#allocation14_spill]]  ;;  %s1471_s30 = smov %s1126_s10 }
  0xf2   : > { %s1472_s10 = smov %s1130_s11  ;;  %28 = sbr.rel (!%p26_p9) target bundleno = 12 (0xc), region = 125 }
  0xf5   : > { %s1473_s11 = smov %s1468_s22 }
  0xf7   :  { %728 = vsyncpa [#allocation3], 1 }
  0xf8   :  { %730 = vsyncpa [#allocation3 + $0x1], 1 }
  0xf9   :  { %731 = vsyncpa [#allocation4], 1 }
  0xfa   :  { %733 = vsyncpa [#allocation4 + $0x1], 1 }
  0xfb   :  { %734 = vsyncpa [#allocation7], 1 }
  0xfc   :  { %736 = vsyncpa [#allocation7 + $0x1], 1 }

</bundles_post_ra>
